<compile_context>
chip_gen: v7x
topology: tpu7x:2x2x1
jax: 0.10.0
libtpu: 0.0.40
codegen_flags: <defaults>
</compile_context>

<pallas_src>
import math
import functools

import jax
import jax.numpy as jnp
from jax.experimental import pallas as pl
from jax.experimental.pallas import tpu as pltpu

_MIB = 1024 * 1024


def _round_up(x, mult):
    return ((x + mult - 1) // mult) * mult


def _class_pad(c):
    # Lane-dense stores need a multiple of 128; use 256 past one tile so the
    # 256-wide MXU on v6e/v7x never runs half-empty passes.
    return _round_up(c, 128) if c <= 128 else _round_up(c, 256)


def _class_chunk(cp, base=512, max_chunks=8):
    # Static (Python-unrolled) chunking of the class dim inside the kernel;
    # bound the unroll factor so huge num_classes doesn't blow up compile time.
    if cp <= base:
        return cp
    ck = base
    while pl.cdiv(cp, ck) > max_chunks:
        ck *= 2
    return ck


def _vmem_caps():
    """Generation-aware VMEM budgets (v7x: 64 MiB/TC, v5e/v6e: 128 MiB)."""
    cap = 0
    try:
        cap = int(getattr(pltpu.get_tpu_info(), "vmem_capacity_bytes", 0) or 0)
    except Exception:
        cap = 0
    if cap <= 0:
        cap = 64 * _MIB  # conservative fallback (works on every generation)
    # (tile-selection budget, hard vmem_limit ceiling): ~38/51 MiB on v7x,
    # ~83/107 MiB on v5e/v6e -- leaves headroom for Mosaic internal scratch.
    return int(cap * 0.62), int(cap * 0.80)


def _vmem_estimate(t, d, cp, chunk, exp_bytes, out_bytes):
    return (2 * t * d * 4                    # x tiles, double-buffered f32
            + d * cp * 2                     # resident bf16 W, single buffer
            + 2 * t * cp * out_bytes         # output tiles, double-buffered
            + t * cp * 4                     # xw scratch (f32)
            + t * cp * exp_bytes             # e_ct scratch
            + 6 * t * min(cp, chunk) * 4)    # chunk-local temporaries headroom


def _choose_batch_tile(batch, d, cp, chunk, budget_bytes, *, target=512,
                       exp_bytes=4, out_bytes=4, min_steps=2):
    tb = min(target, _round_up(batch, 8))
    if min_steps > 1 and batch > 8:
        # >= min_steps grid steps so both of v7x's TensorCores get work.
        tb = min(tb, _round_up(pl.cdiv(batch, min_steps), 8))
    tb = max(8, _round_up(tb, 8))
    while tb > 8 and _vmem_estimate(tb, d, cp, chunk, exp_bytes, out_bytes) > budget_bytes:
        tb = max(8, _round_up(tb // 2, 8))
    return tb


def _cos_m_theta(cos_theta, m):
    # Chebyshev expansion, resolved at trace time (m is a Python int).
    if m == 1:
        return cos_theta
    elif m == 2:
        return 2.0 * cos_theta * cos_theta - 1.0
    elif m == 3:
        return cos_theta * (4.0 * cos_theta * cos_theta - 3.0)
    elif m == 4:
        c2 = cos_theta * cos_theta
        return 8.0 * c2 * (c2 - 1.0) + 1.0  # == 8c^4 - 8c^2 + 1, fewer muls
    else:
        raise ValueError("cos(m*theta) only defined for m in [1, 4]")


# ---------------------------------------------------------------------------
# Main kernel: one batch tile per grid step; W resident (single-buffered) in
# VMEM; tail swept in 128-aligned class chunks to keep live temporaries small.
# ---------------------------------------------------------------------------
def _angular_softmax_kernel(x_ref, w_ref, o_ref, xw_scr, e_scr, *,
                            m, num_classes, chunk, exp_dtype):
    k = m - 1
    sign = -1.0 if (k % 2 == 1) else 1.0
    two_k = 2.0 * float(k)
    cp = xw_scr.shape[-1]
    n_pad = cp - num_classes
    tb = x_ref.shape[0]

    x = x_ref[...].astype(jnp.float32)                        # (TB, D)
    mod_x = jnp.sqrt(jnp.sum(x * x, axis=1, keepdims=True))   # (TB, 1)
    # (TB,1) reciprocal; kept exact because it feeds a degree-4 polynomial.
    inv_mod = pl.reciprocal(mod_x + 1e-6, approx=False)

    # MXU matmul (bf16 in, f32 accumulate) straight into the f32 scratch.
    # x_cos_theta == mod_x * (xw * inv_mod) == xw up to the 1e-6 eps.
    xw_scr[...] = jnp.dot(x.astype(jnp.bfloat16), w_ref[...],
                          preferred_element_type=jnp.float32)

    def x_psi_of(x_ct):
        cos_theta = x_ct * inv_mod
        return mod_x * (sign * _cos_m_theta(cos_theta, m) - two_k)

    chunks = [(c0, min(chunk, cp - c0)) for c0 in range(0, cp, chunk)]

    # Pass 1: per-row LSE shift = max over classes of max(x_cos_theta, x_psi).
    row_max = jnp.full((tb, 1), -jnp.inf, jnp.float32)
    for c0, cw in chunks:
        x_ct = xw_scr[:, c0:c0 + cw]
        mx = jnp.max(jnp.maximum(x_ct, x_psi_of(x_ct)), axis=1, keepdims=True)
        row_max = jnp.maximum(row_max, mx)

    # Pass 2: e_ct = exp(x_cos_theta - row_max); f32 running sum over classes.
    total = jnp.zeros((tb, 1), jnp.float32)
    for c0, cw in chunks:
        e_ct = jnp.exp((xw_scr[:, c0:c0 + cw] - row_max).astype(exp_dtype))
        e_scr[:, c0:c0 + cw] = e_ct
        total = total + jnp.sum(e_ct.astype(jnp.float32), axis=1, keepdims=True)

    # Zero-padded W columns have xw == 0 exactly, so each contributed
    # exp(0 - row_max); remove them with one per-row scalar correction
    # (row_max >= 0 whenever padding exists, so this never overflows).
    if n_pad:
        pad_e = jnp.exp((0.0 - row_max).astype(exp_dtype)).astype(jnp.float32)
        total = total - float(n_pad) * pad_e

    tiny = float(jnp.finfo(jnp.float32).tiny)

    # Pass 3: denom_i = e_psi_i + (total - e_ct_i);
    #         out_i   = log(e_psi_i / denom_i) = (x_psi_i - row_max) - log(denom_i)
    for c0, cw in chunks:
        x_ct = xw_scr[:, c0:c0 + cw]
        x_psi = x_psi_of(x_ct)
        e_psi = jnp.exp((x_psi - row_max).astype(exp_dtype)).astype(jnp.float32)
        e_ct = e_scr[:, c0:c0 + cw].astype(jnp.float32)
        denom = jnp.maximum(e_psi + (total - e_ct), tiny)
        o_ref[:, c0:c0 + cw] = ((x_psi - row_max) - jnp.log(denom)).astype(o_ref.dtype)


# ---------------------------------------------------------------------------
# Wrapper
# ---------------------------------------------------------------------------
def angular_softmax(x, w, m=4, *, block_batch=None,
                    exp_dtype=jnp.float32, out_dtype=jnp.float32):
    """x: (B, D) f32, w: (D, C) f32 -> (B, C) log-probabilities.

    exp_dtype=jnp.bfloat16 runs the two exps on the bf16 EUP path (~2x EUP rate
    on v6e/v7x, slightly lower precision; no benefit on v5e). out_dtype=
    jnp.bfloat16 halves the output HBM write (useful on store-bound v5e shapes).
    """
    B, D = x.shape
    D2, C = w.shape
    assert D == D2
    exp_dtype = jnp.dtype(exp_dtype)
    out_dtype = jnp.dtype(out_dtype)

    # Lane-dense (and, past 128, MXU-256-aligned) class dimension.
    Cp = _class_pad(C)
    if Cp != C:
        w = jnp.pad(w, ((0, 0), (0, Cp - C)))   # zero cols: row norms unchanged

    # One-shot W row normalization (axis=1, matching the PyTorch
    # self.W.div_(self.W.norm(p=2, dim=1, keepdim=True))), emitted in bf16.
    # Done in plain jnp: the previous un-tiled Pallas prologue staged all of W
    # in one VMEM block and OOMs at production sizes; this is one-shot and
    # memory-bound, so XLA handles it with no perf downside.
    # TODO(synk): hoist / cache this outside the call when W is reused.
    w_norm = (w * jax.lax.rsqrt(jnp.sum(w * w, axis=1, keepdims=True))
              ).astype(jnp.bfloat16)

    chunk = _class_chunk(Cp)
    budget, limit_cap = _vmem_caps()
    exp_bytes = int(exp_dtype.itemsize)
    out_bytes = int(out_dtype.itemsize)

    if block_batch is not None:
        TB = _round_up(max(8, int(block_batch)), 8)
    else:
        TB = _choose_batch_tile(B, D, Cp, chunk, budget,
                                exp_bytes=exp_bytes, out_bytes=out_bytes)
    TB = min(TB, _round_up(max(B, 8), 8))
    est_bytes = _vmem_estimate(TB, D, Cp, chunk, exp_bytes, out_bytes)

    Bp = _round_up(B, TB)
    if Bp != B:
        x = jnp.pad(x, ((0, Bp - B), (0, 0)))
    grid = (Bp // TB,)

    vmem_limit = int(min(limit_cap, max(32 * _MIB, est_bytes + 8 * _MIB)))

    # W: constant index_map -> fetched once; single buffer halves its footprint.
    w_index_map = lambda i: (0, 0)
    try:
        w_spec = pl.BlockSpec((D, Cp), w_index_map, pipeline_mode=pl.Buffered(1))
    except TypeError:
        w_spec = pl.BlockSpec((D, Cp), w_index_map)

    kernel = functools.partial(_angular_softmax_kernel, m=m, num_classes=C,
                               chunk=chunk, exp_dtype=exp_dtype)
    out = pl.pallas_call(
        kernel,
        out_shape=jax.ShapeDtypeStruct((Bp, Cp), out_dtype),
        grid_spec=pltpu.PrefetchScalarGridSpec(
            num_scalar_prefetch=0,
            grid=grid,
            in_specs=[
                pl.BlockSpec((TB, D), lambda i: (i, 0)),   # x: streamed per tile
                w_spec,                                    # W: resident
            ],
            out_specs=pl.BlockSpec((TB, Cp), lambda i: (i, 0)),
            scratch_shapes=[
                pltpu.VMEM((TB, Cp), jnp.float32),   # xw (== x_cos_theta)
                pltpu.VMEM((TB, Cp), exp_dtype),     # e_ct
            ],
        ),
        compiler_params=pltpu.CompilerParams(
            dimension_semantics=("parallel",),
            vmem_limit_bytes=vmem_limit,
        ),
        cost_estimate=pl.CostEstimate(
            flops=2 * Bp * D * Cp,
            transcendentals=3 * Bp * Cp,
            bytes_accessed=4 * Bp * D + 2 * D * Cp + out_bytes * Bp * Cp,
        ),
    )(x, w_norm)

    return out[:B, :C]


# ---------------------------------------------------------------------------
# References
# ---------------------------------------------------------------------------
def angular_softmax_ref(x, w, m=4, *, exp_dtype=jnp.float32):
    """Mirrors the kernel math (padding, bf16 matmul, pad-corrected stable LSE)."""
    exp_dtype = jnp.dtype(exp_dtype)
    C = w.shape[1]
    Cp = _class_pad(C)
    k = m - 1
    sign = (-1.0) ** k
    wp = jnp.pad(w, ((0, 0), (0, Cp - C))) if Cp != C else w
    wn = (wp * jax.lax.rsqrt(jnp.sum(wp * wp, axis=1, keepdims=True))
          ).astype(jnp.bfloat16)
    mod_x = jnp.sqrt(jnp.sum(x * x, axis=1, keepdims=True))
    inv_mod = 1.0 / (mod_x + 1e-6)
    xw = jnp.dot(x.astype(jnp.bfloat16), wn, preferred_element_type=jnp.float32)
    x_ct = xw
    x_psi = mod_x * (sign * _cos_m_theta(xw * inv_mod, m) - 2.0 * k)
    row_max = jnp.max(jnp.maximum(x_ct, x_psi), axis=1, keepdims=True)
    e_ct = jnp.exp((x_ct - row_max).astype(exp_dtype)).astype(jnp.float32)
    e_psi = jnp.exp((x_psi - row_max).astype(exp_dtype)).astype(jnp.float32)
    total = jnp.sum(e_ct, axis=1, keepdims=True)
    if Cp != C:
        pad_e = jnp.exp((0.0 - row_max).astype(exp_dtype)).astype(jnp.float32)
        total = total - float(Cp - C) * pad_e
    tiny = float(jnp.finfo(jnp.float32).tiny)
    denom = jnp.maximum(e_psi + (total - e_ct), tiny)
    out = (x_psi - row_max) - jnp.log(denom)
    return out[:, :C]


def angular_softmax_torch_ref(x, w, m=4):
    """Faithful f32 transcription of the original PyTorch forward."""
    k = m - 1
    wn = w / jnp.linalg.norm(w, axis=1, keepdims=True)
    mod_x = jnp.linalg.norm(x, axis=1, keepdims=True)
    xw = x @ wn
    cos_theta = xw / (mod_x + 1e-6)
    x_cos_theta = mod_x * cos_theta
    psi = ((-1.0) ** k) * _cos_m_theta(cos_theta, m) - 2.0 * k
    x_psi = mod_x * psi
    e_ct = jnp.exp(x_cos_theta)
    e_psi = jnp.exp(x_psi)
    total = jnp.sum(e_ct, axis=1, keepdims=True)
    denom = e_psi + (total - e_ct)
    return jnp.log(e_psi / denom)


if __name__ == "__main__":
    feature_dim = 32
    num_classes = 8
    batch = 32
    m = 4

    key = jax.random.PRNGKey(0)
    kx, kw = jax.random.split(key)

    # Deterministic init matching the module: W ~ N(0, std^2),
    # std = sqrt(2 / (feature_dim + num_classes)).
    std = math.sqrt(2.0 / float(feature_dim + num_classes))
    W = std * jax.random.normal(kw, (feature_dim, num_classes), dtype=jnp.float32)
    x = jax.random.normal(kx, (batch, feature_dim), dtype=jnp.float32)

    # Default (f32-exp) path; auto tiling picks >= 2 grid steps (TB=16, grid=2).
    out = angular_softmax(x, W, m=m)
    out = jax.block_until_ready(out)
    assert out.shape == (batch, num_classes)
    assert bool(jnp.all(jnp.isfinite(out)))

    # Tight check against a reference that mirrors the kernel math exactly.
    ref = angular_softmax_ref(x, W, m=m)
    assert jnp.allclose(out, ref, atol=2e-3, rtol=2e-3), "mismatch vs mirrored reference"

    # Looser check against the faithful f32 PyTorch-style pipeline
    # (difference is the intentional bf16 matmul + eps simplification).
    ref32 = angular_softmax_torch_ref(x, W, m=m)
    assert jnp.allclose(out, ref32, atol=0.5, rtol=0.05), "mismatch vs f32 reference"

    # bf16-EUP-exp fast path (v6e/v7x EUP relief), smaller explicit batch tile.
    out_bf = angular_softmax(x, W, m=m, block_batch=8, exp_dtype=jnp.bfloat16)
    out_bf = jax.block_until_ready(out_bf)
    assert bool(jnp.all(jnp.isfinite(out_bf)))
    ref_bf = angular_softmax_ref(x, W, m=m, exp_dtype=jnp.bfloat16)
    assert jnp.allclose(out_bf, ref_bf, atol=5e-2, rtol=5e-2), "mismatch (bf16 exp path)"
    assert jnp.allclose(out_bf, ref32, atol=0.5, rtol=0.05), "mismatch vs f32 reference (bf16)"

    print("KERNEL_OK")
</pallas_src>

<mosaic_0001>
module attributes {stable_mosaic.version = 11 : i64} {
  func.func @_angular_softmax_kernel(%arg0: i32, %arg1: memref<16x32xf32, #tpu.memory_space<vmem>>, %arg2: memref<32x128xbf16, #tpu.memory_space<vmem>>, %arg3: memref<16x128xf32, #tpu.memory_space<vmem>>, %arg4: memref<16x128xf32, #tpu.memory_space<vmem>>, %arg5: memref<16x128xf32, #tpu.memory_space<vmem>>) attributes {dimension_semantics = [#tpu.dimension_semantics<parallel>], iteration_bounds = array<i64: 2>, scalar_prefetch = 0 : i64, scratch_operands = 2 : i64, tpu.core_type = #tpu.core_type<tc>, window_params = [{transform_indices = @transform_0, window_bounds = array<i64: 16, 32>}, {pipeline_mode = #tpu.pipeline_mode<synchronous>, transform_indices = @transform_1, window_bounds = array<i64: 32, 128>}, {transform_indices = @transform_2, window_bounds = array<i64: 16, 128>}]} {
    %c0 = arith.constant 0 : index
    %c0_0 = arith.constant 0 : index
    %0 = vector.load %arg1[%c0, %c0_0] : memref<16x32xf32, #tpu.memory_space<vmem>>, vector<16x32xf32>
    %1 = arith.mulf %0, %0 : vector<16x32xf32>
    %cst = arith.constant dense<0.000000e+00> : vector<16xf32>
    %2 = vector.multi_reduction <add>, %1, %cst [1] : vector<16x32xf32> to vector<16xf32>
    %3 = vector.shape_cast %2 : vector<16xf32> to vector<16x1xf32>
    %4 = math.sqrt %3 : vector<16x1xf32>
    %cst_1 = arith.constant 9.99999997E-7 : f32
    %5 = vector.broadcast %cst_1 : f32 to vector<16x1xf32>
    %6 = arith.addf %4, %5 : vector<16x1xf32>
    %7 = tpu.reciprocal %6 : vector<16x1xf32> -> vector<16x1xf32>
    %8 = arith.truncf %0 : vector<16x32xf32> to vector<16x32xbf16>
    %c0_2 = arith.constant 0 : index
    %c0_3 = arith.constant 0 : index
    %9 = vector.load %arg2[%c0_2, %c0_3] : memref<32x128xbf16, #tpu.memory_space<vmem>>, vector<32x128xbf16>
    %cst_4 = arith.constant dense<0.000000e+00> : vector<16x128xf32>
    %10 = tpu.matmul %8, %9, %cst_4 {dimension_numbers = #tpu.dot_dimension_numbers<[1], [0], [0], [1], [0, 0, 1, 1], [], []>} : vector<16x32xbf16>, vector<32x128xbf16>, vector<16x128xf32> -> vector<16x128xf32>
    %c0_5 = arith.constant 0 : index
    %c0_6 = arith.constant 0 : index
    %11 = vector.load %arg4[%c0_5, %c0_6] : memref<16x128xf32, #tpu.memory_space<vmem>>, vector<16x128xf32>
    tpu.vector_store %arg4[%c0_5, %c0_6], %10 {strides = array<i32>} : memref<16x128xf32, #tpu.memory_space<vmem>>, vector<16x128xf32>,
    %cst_7 = arith.constant 0xFF800000 : f32
    %12 = vector.broadcast %cst_7 : f32 to vector<16x1xf32>
    %c0_8 = arith.constant 0 : index
    %c0_9 = arith.constant 0 : index
    %13 = vector.load %arg4[%c0_8, %c0_9] : memref<16x128xf32, #tpu.memory_space<vmem>>, vector<16x128xf32>
    %14 = vector.broadcast %7 : vector<16x1xf32> to vector<16x128xf32>
    %15 = arith.mulf %13, %14 : vector<16x128xf32>
    %16 = arith.mulf %15, %15 : vector<16x128xf32>
    %cst_10 = arith.constant 8.000000e+00 : f32
    %17 = vector.broadcast %cst_10 : f32 to vector<16x128xf32>
    %18 = arith.mulf %17, %16 : vector<16x128xf32>
    %cst_11 = arith.constant 1.000000e+00 : f32
    %19 = vector.broadcast %cst_11 : f32 to vector<16x128xf32>
    %20 = arith.subf %16, %19 : vector<16x128xf32>
    %21 = arith.mulf %18, %20 : vector<16x128xf32>
    %cst_12 = arith.constant 1.000000e+00 : f32
    %22 = vector.broadcast %cst_12 : f32 to vector<16x128xf32>
    %23 = arith.addf %21, %22 : vector<16x128xf32>
    %cst_13 = arith.constant -1.000000e+00 : f32
    %24 = vector.broadcast %cst_13 : f32 to vector<16x128xf32>
    %25 = arith.mulf %24, %23 : vector<16x128xf32>
    %cst_14 = arith.constant 6.000000e+00 : f32
    %26 = vector.broadcast %cst_14 : f32 to vector<16x128xf32>
    %27 = arith.subf %25, %26 : vector<16x128xf32>
    %28 = vector.broadcast %4 : vector<16x1xf32> to vector<16x128xf32>
    %29 = arith.mulf %28, %27 : vector<16x128xf32>
    %30 = arith.maximumf %13, %29 : vector<16x128xf32>
    %cst_15 = arith.constant dense<0xFF800000> : vector<16xf32>
    %31 = vector.multi_reduction <maximumf>, %30, %cst_15 [1] : vector<16x128xf32> to vector<16xf32>
    %32 = vector.shape_cast %31 : vector<16xf32> to vector<16x1xf32>
    %33 = arith.maximumf %12, %32 : vector<16x1xf32>
    %cst_16 = arith.constant 0.000000e+00 : f32
    %34 = vector.broadcast %cst_16 : f32 to vector<16x1xf32>
    %c0_17 = arith.constant 0 : index
    %c0_18 = arith.constant 0 : index
    %35 = vector.load %arg4[%c0_17, %c0_18] : memref<16x128xf32, #tpu.memory_space<vmem>>, vector<16x128xf32>
    %36 = vector.broadcast %33 : vector<16x1xf32> to vector<16x128xf32>
    %37 = arith.subf %35, %36 : vector<16x128xf32>
    %38 = math.exp %37 : vector<16x128xf32>
    %c0_19 = arith.constant 0 : index
    %c0_20 = arith.constant 0 : index
    %39 = vector.load %arg5[%c0_19, %c0_20] : memref<16x128xf32, #tpu.memory_space<vmem>>, vector<16x128xf32>
    tpu.vector_store %arg5[%c0_19, %c0_20], %38 {strides = array<i32>} : memref<16x128xf32, #tpu.memory_space<vmem>>, vector<16x128xf32>,
    %cst_21 = arith.constant dense<0.000000e+00> : vector<16xf32>
    %40 = vector.multi_reduction <add>, %38, %cst_21 [1] : vector<16x128xf32> to vector<16xf32>
    %41 = vector.shape_cast %40 : vector<16xf32> to vector<16x1xf32>
    %42 = arith.addf %34, %41 : vector<16x1xf32>
    %cst_22 = arith.constant 0.000000e+00 : f32
    %43 = vector.broadcast %cst_22 : f32 to vector<16x1xf32>
    %44 = arith.subf %43, %33 : vector<16x1xf32>
    %45 = math.exp %44 : vector<16x1xf32>
    %cst_23 = arith.constant 1.200000e+02 : f32
    %46 = vector.broadcast %cst_23 : f32 to vector<16x1xf32>
    %47 = arith.mulf %46, %45 : vector<16x1xf32>
    %48 = arith.subf %42, %47 : vector<16x1xf32>
    %c0_24 = arith.constant 0 : index
    %c0_25 = arith.constant 0 : index
    %49 = vector.load %arg4[%c0_24, %c0_25] : memref<16x128xf32, #tpu.memory_space<vmem>>, vector<16x128xf32>
    %50 = vector.broadcast %7 : vector<16x1xf32> to vector<16x128xf32>
    %51 = arith.mulf %49, %50 : vector<16x128xf32>
    %52 = arith.mulf %51, %51 : vector<16x128xf32>
    %cst_26 = arith.constant 8.000000e+00 : f32
    %53 = vector.broadcast %cst_26 : f32 to vector<16x128xf32>
    %54 = arith.mulf %53, %52 : vector<16x128xf32>
    %cst_27 = arith.constant 1.000000e+00 : f32
    %55 = vector.broadcast %cst_27 : f32 to vector<16x128xf32>
    %56 = arith.subf %52, %55 : vector<16x128xf32>
    %57 = arith.mulf %54, %56 : vector<16x128xf32>
    %cst_28 = arith.constant 1.000000e+00 : f32
    %58 = vector.broadcast %cst_28 : f32 to vector<16x128xf32>
    %59 = arith.addf %57, %58 : vector<16x128xf32>
    %cst_29 = arith.constant -1.000000e+00 : f32
    %60 = vector.broadcast %cst_29 : f32 to vector<16x128xf32>
    %61 = arith.mulf %60, %59 : vector<16x128xf32>
    %cst_30 = arith.constant 6.000000e+00 : f32
    %62 = vector.broadcast %cst_30 : f32 to vector<16x128xf32>
    %63 = arith.subf %61, %62 : vector<16x128xf32>
    %64 = vector.broadcast %4 : vector<16x1xf32> to vector<16x128xf32>
    %65 = arith.mulf %64, %63 : vector<16x128xf32>
    %66 = vector.broadcast %33 : vector<16x1xf32> to vector<16x128xf32>
    %67 = arith.subf %65, %66 : vector<16x128xf32>
    %68 = math.exp %67 : vector<16x128xf32>
    %c0_31 = arith.constant 0 : index
    %c0_32 = arith.constant 0 : index
    %69 = vector.load %arg5[%c0_31, %c0_32] : memref<16x128xf32, #tpu.memory_space<vmem>>, vector<16x128xf32>
    %70 = vector.broadcast %48 : vector<16x1xf32> to vector<16x128xf32>
    %71 = arith.subf %70, %69 : vector<16x128xf32>
    %72 = arith.addf %68, %71 : vector<16x128xf32>
    %cst_33 = arith.constant 1.17549435E-38 : f32
    %73 = vector.broadcast %cst_33 : f32 to vector<16x128xf32>
    %74 = arith.maximumf %72, %73 : vector<16x128xf32>
    %75 = vector.broadcast %33 : vector<16x1xf32> to vector<16x128xf32>
    %76 = arith.subf %65, %75 : vector<16x128xf32>
    %77 = math.log %74 : vector<16x128xf32>
    %78 = arith.subf %76, %77 : vector<16x128xf32>
    %c0_34 = arith.constant 0 : index
    %c0_35 = arith.constant 0 : index
    %79 = vector.load %arg3[%c0_34, %c0_35] : memref<16x128xf32, #tpu.memory_space<vmem>>, vector<16x128xf32>
    tpu.vector_store %arg3[%c0_34, %c0_35], %78 {strides = array<i32>} : memref<16x128xf32, #tpu.memory_space<vmem>>, vector<16x128xf32>,
    return
  }
  func.func @transform_0(%arg0: i32) -> (i32, i32) {
    %c0_i32 = arith.constant 0 : i32
    %c0_i32_0 = arith.constant 0 : i32
    return %arg0, %c0_i32 : i32, i32
  }
  func.func @transform_1(%arg0: i32) -> (i32, i32) {
    %c0_i32 = arith.constant 0 : i32
    %c0_i32_0 = arith.constant 0 : i32
    %c0_i32_1 = arith.constant 0 : i32
    return %c0_i32, %c0_i32_0 : i32, i32
  }
  func.func @transform_2(%arg0: i32) -> (i32, i32) {
    %c0_i32 = arith.constant 0 : i32
    %c0_i32_0 = arith.constant 0 : i32
    return %arg0, %c0_i32 : i32, i32
  }
}

</mosaic_0001>

<bundles_post_ra>
// kernel: tpu_custom_call.1
= control target key start
LH: loop header
LB: loop body
LE: loop exit
PB: predicated region body
PF: predicated region fallthrough
CT: control target
= control target key end

     0   :  { %7 = vsyncpa [#allocation5], 0  ;;  %s953_s0 = inlined_call_operand.hbm [shape: f32[32,32], index: 0, kind: input, shape index: {}]   ;;  %s954_s1 = inlined_call_operand.hbm [shape: bf16[32,128], index: 1, kind: input, shape index: {}]   ;;  %s955_s2 = inlined_call_operand.hbm [shape: f32[32,128], index: 2, kind: output, shape index: {}]  }
   0x1   :  { %9 = vsyncpa [#allocation5 + $0x1], 0 }
   0x2   :  { %10 = vsyncpa [#allocation8], 0 }
   0x3   :  { %11 = vsyncpa [#allocation6], 0 }
   0x4   :  { %13 = vsyncpa [#allocation6 + $0x1], 0  ;;  %s748_s9 = smov 0   ;;  %s750_s10 = smov 0  }
   0x5   :  { %s752_s11 = smov 0   ;;  %s754_s12 = smov 0  }
   0x6 LB: > { %s769_s13 = sadd.s32 4294967295, %s720_s12   ;;  %s461_s14 = sadd.s32 4294967294, %s720_s12   ;;  %s720_s12 = sphi %s754_s12, %s975_s12   ;;  %s716_s11 = sphi %s752_s11, %s974_s11   ;;  %s712_s10 = sphi %s750_s10, %s973_s10   ;;  %s708_s9 = sphi %s748_s9, %s972_s9  }
   0x7   : > { %p39_p0 = scmp.ne.s32.totalorder %s712_s10, %s708_s9  ;;  %p956_p1 = scmp.eq.s32.totalorder %s769_s13, 0 }
   0x8   : > { %p90_p3 = scmp.eq.s32.totalorder %s461_s14, 1  ;;  %p462_p5 = scmp.ge.s32.totalorder %s720_s12, 1 }
   0x9   : > { %p778_p4 = por %p956_p1, %p39_p0  ;;  %p97_p7 = scmp.lt.s32.totalorder %s720_s12, 3 }
   0xa   : > { %p783_p6 = por %p90_p3, %p39_p0  ;;  %s722_s18 = smov [#allocation7]  }
   0xb   : > { %s959_s15 = scalar_select %p778_p4, 1, 0 }
   0xc   : > { %s960_s16 = scalar_select %p783_p6, 1, 0 }
   0xd   : > { %p788_p8 = pnand %p462_p5, %p97_p7  ;;  %s109_s19 = sshll.u32 %s722_s18, 4  ;;  %s792_s19 = int_to_ptr.vmem [resolvable:$true] %s109_s19 }
   0xe   : > { %s804_s21 = sadd.s32 1, %s720_s12   ;;  %s26_s22 = sadd.s32 1, %s716_s11 }
   0xf   : > { %s961_s17 = scalar_select %p788_p8, 1, 0 }
  0x10   : > { %p509_p9 = pneg %p788_p8  ;;  %s23_s23 = ssub.s32 %s720_s12, %s804_s21 }
  0x11   : > { %s592_s26 = scalar_lea.hbm %s954_s1, 256 }
  0x12   : > { %p799_p11 = pnand %p509_p9, %p956_p1  ;;  %p593_p12 = scmp.ne.s32.totalorder %s954_s1, %s592_s26 }
  0x13   : > { %p599_p5 = scmp.lt.u32.totalorder %s592_s26, %s954_s1 }
  0x14   : > { %p594_p13 = pneg %p799_p11 }
  0x16   : > { %p595_p0 = pnand %p594_p13, %p593_p12 }
  0x18   : > { %p596_p3 = pneg %p595_p0 }
  0x1a   : > { %p601_p7 = pnand %p599_p5, %p596_p3 }
  0x1c   : > { %604 = shalt.err (!%p601_p7)
}
  0x1d   : > { %s605_s3 = scalar_lea.vmem %s792_s19, 256  ;;  %p613_p2 = scmp.lt.s32.totalorder %s792_s19, %s792_s19 }
  0x1e   : > { %p606_p9 = scmp.ne.s32.totalorder %s792_s19, %s605_s3  ;;  %p614_p6 = scmp.lt.s32.totalorder %s605_s3, %s605_s3 }
  0x20   : > { %p608_p10 = pnand %p606_p9, %p594_p13  ;;  %p615_p4 = por %p614_p6, %p613_p2 }
  0x22   : > { %p609_p1 = pneg %p608_p10 }
  0x24   : > { %p616_p8 = pnand %p615_p4, %p609_p1 }
  0x26   : > { %619 = shalt.err (!%p616_p8)
}
  0x27   : > { %s723_s4 = smov 64   ;;  %s724_s5 = smov 4  }
  0x28   : > { %512 = dma.hbm_to_vmem [thread:$0]  (!%p799_p11), %s954_s1, 256, %s792_s19, [#allocation8], %s723_s4, %s723_s4, %s724_s5  }
  0x29   : > { %p24_p2 = scmp.eq.s32.totalorder %s23_s23, 0  ;;  %p33_p1 = scmp.ne.s32.totalorder %s716_s11, %s712_s10 }
  0x2a   : > { %p34_p4 = scmp.eq.s32.totalorder %s720_s12, 0  ;;  %p522_p6 = scmp.lt.s32.totalorder %s720_s12, 2 }
  0x2b   : > { %s835_s8 = scalar_select %p24_p2, %s716_s11, %s26_s22  }
  0x2c   : > { %p35_p8 = por %p34_p4, %p33_p1  ;;  %p963_p10 = scmp.eq.s32.totalorder %s769_s13, 1 }
  0x2d   : > { %s123_s18 = sand.u32 1, %s716_s11   ;;  %s488_s24 = sshll.u32 %s720_s12, 8 }
  0x2e   : > { %p839_p12 = por %p963_p10, %p33_p1  ;;  %s465_s25 = sshll.u32 %s123_s18, 4 }
  0x2f   : > { %s848_s27 = scalar_lea.hbm %s953_s0, %s488_s24  ;;  %s127_s19 = scalar_lea.vmem [#allocation4], %s465_s25 }
  0x30   : > { %s134_s22 = sshll.u32 %s127_s19, 4  ;;  %p850_p11 = pnand %p522_p6, %p35_p8  ;;  %s854_s22 = int_to_ptr.vmem [resolvable:$true] %s134_s22 }
  0x31   : > { %s856_s28 = scalar_lea.sflag [#allocation5], %s123_s18  ;;  %s620_s29 = scalar_lea.hbm %s848_s27, 256 }
  0x32   : > { %p621_p13 = scmp.ne.s32.totalorder %s848_s27, %s620_s29  ;;  %p622_p0 = pneg %p850_p11 }
  0x33   : > { %s625_s4 = scalar_lea.hbm %s953_s0, 512  ;;  %p626_p7 = scmp.lt.u32.totalorder %s848_s27, %s953_s0 }
  0x34   : > { %p623_p3 = pnand %p622_p0, %p621_p13  ;;  %p627_p9 = scmp.lt.u32.totalorder %s625_s4, %s620_s29 }
  0x35   : > { %p629_p1 = scmp.lt.u32.totalorder %s620_s29, %s848_s27 }
  0x36   : > { %p624_p5 = pneg %p623_p3  ;;  %p628_p2 = por %p627_p9, %p626_p7 }
  0x38   : > { %p630_p4 = por %p629_p1, %p628_p2 }
  0x3a   : > { %p631_p6 = pnand %p630_p4, %p624_p5 }
  0x3c   : > { %634 = shalt.err (!%p631_p6)
}
  0x3d   : > { %s635_s7 = scalar_lea.vmem %s854_s22, 256  ;;  %s725_s18 = smov [#allocation4]  }
  0x3e   : > { %p636_p8 = scmp.ne.s32.totalorder %s854_s22, %s635_s7  ;;  %s640_s24 = sshll.u32 %s725_s18, 4  ;;  %s641_s24 = int_to_ptr.vmem [resolvable:$false] %s640_s24 }
  0x3f   : > { %s642_s25 = scalar_lea.vmem %s641_s24, 512  ;;  %p643_p3 = scmp.lt.s32.totalorder %s854_s22, %s641_s24 }
  0x40   : > { %p638_p10 = pnand %p636_p8, %p622_p0  ;;  %p644_p7 = scmp.lt.s32.totalorder %s642_s25, %s635_s7 }
  0x42   : > { %p639_p13 = pneg %p638_p10  ;;  %p645_p9 = por %p644_p7, %p643_p3 }
  0x44   : > { %p646_p2 = pnand %p645_p9, %p639_p13 }
  0x46   : > { %649 = shalt.err (!%p646_p2)
}
  0x47   : > { %s726_s20 = smov 128   ;;  %s727_s26 = smov 8  }
  0x48   : > { %516 = dma.hbm_to_vmem [thread:$0]  (!%p850_p11), %s848_s27, 256, %s854_s22, %s856_s28, %s726_s20, %s726_s20, %s727_s26  }
  0x49   : > { %p966_p0 = scmp.ne.s32.totalorder %s961_s17, 0 }
  0x4a   : > { %s887_s19 = sand.u32 (!%p966_p0), 1, %s712_s10   ;;  %p967_p5 = scmp.ne.s32.totalorder (!%p966_p0), %s959_s15, 0 }
  0x4b   : > { %146 = sbr.rel (%p966_p0) target bundleno = 666 (0x29a), region = 28  ;;  %s469_s29 = sshll.u32 (!%p966_p0), %s887_s19, 4 }
  0x4c   : > { %s149_s30 = scalar_lea.sflag (!%p966_p0), [#allocation5], %s887_s19  ;;  %s152_s3 = scalar_lea.vmem (!%p966_p0), [#allocation4], %s469_s29 }
  0x52   : > { %695 = dma.done.wait (%p967_p5), %s149_s30, 256  }
  0x53   : > { %697 = vsyncadd (%p967_p5), %s149_s30, 4294967040  ;;  %p968_p11 = scmp.eq.s32.totalorder %s769_s13, 0 }
  0x55   : > { %699 = dma.done.wait (%p968_p11), [#allocation8], 256   ;;  %p969_p1 = pmov %p968_p11 }
  0x56   : > { %v728_v0 = vmov 0.0   ;;  %vm729_vm0 = vmmov 0   ;;  %v566_v1 = vld [vmem:[#allocation7] sm:$0xff]   ;;  %v567_v2 = vld [vmem:[#allocation7 + $0x8] sm:$0xff]   ;;  %vm184_vm1 = vcmask 261120   ;;  %s489_s15 = sshll.u32 %s769_s13, 8 }
  0x57   : > { %701 = vsyncadd (%p969_p1), [#allocation8], 4294967040  ;;  %493 = vmatprep.subr.bf16.mxu0 %v728_v0  ;;  %497 = vmatprep.mubr.msk.bf16.mxu0 %vm729_vm0, %v728_v0  ;;  %v180_v3 = vld [vmem:[%s152_s3] sm:$0xff]  ;;  %v181_v4 = vld [vmem:[%s152_s3 + $0x8] sm:$0xff]  ;;  %s176_s17 = scalar_lea.vmem [#allocation9], %s469_s29  ;;  %s907_s28 = scalar_lea.hbm %s955_s2, %s489_s15 }
  0x58   : > { %494 = vmatpush3.bf16.msra.mxu0 %v566_v1  ;;  %v182_v5 = vmul.f32 %v180_v3, %v180_v3  ;;  %v183_v6 = vmul.f32 %v181_v4, %v181_v4  ;;  %v209_v7 = vpack.c.bf16 %v181_v4, %v180_v3  ;;  %s378_s27 = sshll.u32 %s176_s17, 4  ;;  %s365_s4 = scalar_lea.sflag [#allocation6], %s887_s19  ;;  %s909_s27 = int_to_ptr.vmem [resolvable:$true] %s378_s27 }
  0x59   : > { %495 = vmatprep.subr.bf16.mxu0 %v728_v0  ;;  %s650_s13 = scalar_lea.vmem %s909_s27, 256  ;;  %s730_s5 = smov [#allocation9]  }
  0x5a   : > { %v185_v8 = vsel %vm184_vm1, %v182_v5, 0.0  ;;  %v188_v9 = vsel %vm184_vm1, %v183_v6, 0.0  ;;  %p651_p4 = scmp.ne.s32.totalorder %s909_s27, %s650_s13  ;;  %s654_s6 = sshll.u32 %s730_s5, 4  ;;  %s655_s6 = int_to_ptr.vmem [resolvable:$false] %s654_s6 }
  0x5b   : > { %186 = vadd.xlane.f32.xlu0 %v185_v8  ;;  %s656_s7 = scalar_lea.vmem %s655_s6, 512  ;;  %p657_p10 = scmp.lt.s32.totalorder %s909_s27, %s655_s6 }
  0x5c   : > { %496 = vmatpush3.bf16.msra.mxu0 %v567_v2  ;;  %p652_p6 = pnand %p651_p4, %p839_p12  ;;  %p658_p13 = scmp.lt.s32.totalorder %s656_s7, %s650_s13 }
  0x5e   : > { %p653_p8 = pneg %p652_p6  ;;  %p659_p3 = por %p658_p13, %p657_p10 }
  0x5f   : > { %498 = vmatmul.mubr.msk.bf16.vlgmr.msra.gmra.mrb[0].mxu0 %vm184_vm1, %v209_v7  ;;  %189 = vadd.xlane.f32.xlu0 %v188_v9 }
  0x60   : > { %p660_p7 = pnand %p659_p3, %p653_p8 }
  0xe8   : > { %v187_v10 = vpop.xlane.xlu0 %186 }
  0xe9   : > { %568 = vrsqrt.f32 %v187_v10  ;;  %vm193_vm2 = vcmp.eq.f32.partialorder %v187_v10, inf  ;;  %v196_v16 = vand.u32 2147483648, %v187_v10  ;;  %vm195_vm4 = vcmp.eq.f32.partialorder %v187_v10, 0.0 }
  0xec   : > { %v190_v11 = vpop.xlane.xlu0 %189 }
  0xed   : > { %570 = vrsqrt.f32 %v190_v11  ;;  %vm200_vm3 = vcmp.eq.f32.partialorder %v190_v11, inf  ;;  %v203_v18 = vand.u32 2147483648, %v190_v11  ;;  %vm202_vm5 = vcmp.eq.f32.partialorder %v190_v11, 0.0 }
  0xf3   : > { %v569_v12 = vpop.eup %568 }
  0xf4   : > { %v192_v14 = vmul.f32 %v569_v12, %v187_v10 }
  0xf6   : > { %v194_v17 = vsel %vm193_vm2, %v187_v10, %v192_v14 }
  0xf7   : > { %v571_v13 = vpop.eup %570  ;;  %v197_v20 = vsel %vm195_vm4, %v196_v16, %v194_v17 }
  0xf8   : > { %v199_v15 = vmul.f32 %v571_v13, %v190_v11  ;;  %v205_v22 = vadd.f32 1e-06, %v197_v20 }
  0xfa   : > { %v201_v19 = vsel %vm200_vm3, %v190_v11, %v199_v15  ;;  %572 = vrcp.f32 %v205_v22 }
  0xfb   : > { %v204_v21 = vsel %vm202_vm5, %v203_v18, %v201_v19 }
  0xfc   : > { %v206_v23 = vadd.f32 1e-06, %v204_v21 }
  0xfe   : > { %574 = vrcp.f32 %v206_v23 }
 0x104   : > { %v573_v24 = vpop.eup %572 }
 0x108   : > { %v575_v28 = vpop.eup %574 }
 0x132   : > { %v263_v25 = vpop.f32.mrb[0].mxu0 }
 0x133   : > { %v499_v26 = vpop.f32.mrb[1].mxu0  ;;  %v274_v27 = vmul.f32 %v573_v24, %v263_v25 }
 0x134   : > { %v266_v29 = vpop.f32.mrb[2].mxu0 }
 0x135   : > { %v275_v30 = vmul.f32 %v575_v28, %v266_v29  ;;  %v500_v31 = vpop.f32.mrb[3].mxu0  ;;  %v276_v32 = vmul.f32 %v274_v27, %v274_v27 }
 0x137   : > { %v277_v33 = vmul.f32 %v275_v30, %v275_v30  ;;  %v278_v34 = vmul.f32 8.0, %v276_v32  ;;  %v475_v35 = vadd.f32 -1.0, %v276_v32 }
 0x139   : > { %v279_v36 = vmul.f32 8.0, %v277_v33  ;;  %v476_v37 = vadd.f32 -1.0, %v277_v33  ;;  %v282_v38 = vmul.f32 %v475_v35, %v278_v34 }
 0x13b   : > { %v284_v39 = vadd.f32 1.0, %v282_v38  ;;  %v283_v40 = vmul.f32 %v476_v37, %v279_v36 }
 0x13d   : > { %v286_v41 = vmul.f32 -1.0, %v284_v39  ;;  %v285_v42 = vadd.f32 1.0, %v283_v40 }
 0x13f   : > { %v477_v43 = vadd.f32 -6.0, %v286_v41  ;;  %v287_v44 = vmul.f32 -1.0, %v285_v42 }
 0x141   : > { %v290_v45 = vmul.f32 %v477_v43, %v197_v20  ;;  %v478_v46 = vadd.f32 -6.0, %v287_v44 }
 0x143   : > { %v292_v47 = vmax.f32 %v263_v25, %v290_v45  ;;  %v291_v48 = vmul.f32 %v478_v46, %v204_v21 }
 0x145   : > { %294 = vmax.xlane.f32.xlu1 %v292_v47  ;;  %v293_v49 = vmax.f32 %v266_v29, %v291_v48 }
 0x149   : > { %296 = vmax.xlane.f32.xlu1 %v293_v49 }
 0x1d2   : > { %v295_v50 = vpop.xlane.xlu1 %294 }
 0x1d3   : > { %v298_v51 = vsub.f32 %v263_v25, %v295_v50  ;;  %v312_v58 = vsub.f32 0.0, %v295_v50  ;;  %v342_v61 = vsub.f32 %v290_v45, %v295_v50 }
 0x1d5   : > { %v300_v52 = vmul.f32 1.442695, %v298_v51  ;;  %v314_v59 = vmul.f32 1.442695, %v312_v58  ;;  %v344_v63 = vmul.f32 1.442695, %v342_v61 }
 0x1d6   : > { %v297_v53 = vpop.xlane.xlu1 %296 }
 0x1d7   : > { %576 = vpow2.f32 %v300_v52  ;;  %v299_v54 = vsub.f32 %v266_v29, %v297_v53  ;;  %v313_v60 = vsub.f32 0.0, %v297_v53  ;;  %v343_v0 = vsub.f32 %v291_v48, %v297_v53 }
 0x1d9   : > { %v302_v55 = vmul.f32 1.442695, %v299_v54  ;;  %v316_v62 = vmul.f32 1.442695, %v313_v60  ;;  %v346_v1 = vmul.f32 1.442695, %v343_v0 }
 0x1db   : > { %578 = vpow2.f32 %v302_v55 }
 0x1dc   : > { %580 = vpow2.f32 %v314_v59 }
 0x1dd   : > { %582 = vpow2.f32 %v316_v62 }
 0x1de   : > { %584 = vpow2.f32 %v344_v63 }
 0x1df   : > { %586 = vpow2.f32 %v346_v1 }
 0x1e1   : > { %v577_v56 = vpop.eup %576 }
 0x1e2   : > { %306 = vadd.xlane.f32.xlu0 %v577_v56 }
 0x1e5   : > { %v579_v57 = vpop.eup %578 }
 0x1e6   : > { %308 = vadd.xlane.f32.xlu1 %v579_v57  ;;  %v581_v2 = vpop.eup %580 }
 0x1e7   : > { %v318_v3 = vmul.f32 120.0, %v581_v2  ;;  %v583_v4 = vpop.eup %582 }
 0x1e8   : > { %v319_v8 = vmul.f32 120.0, %v583_v4  ;;  %v585_v9 = vpop.eup %584 }
 0x1e9   : > { %v587_v15 = vpop.eup %586 }
 0x26f   : > { %v307_v5 = vpop.xlane.xlu0 %306 }
 0x270   : > { %v320_v6 = vsub.f32 %v307_v5, %v318_v3 }
 0x272   : > { %v350_v7 = vsub.f32 %v320_v6, %v577_v56 }
 0x273   : > { %v309_v10 = vpop.xlane.xlu1 %308 }
 0x274   : > { %v352_v11 = vadd.f32 %v585_v9, %v350_v7  ;;  %v321_v12 = vsub.f32 %v309_v10, %v319_v8 }
 0x276   : > { %v354_v13 = vmax.f32 %v352_v11, 1.1754944e-38  ;;  %v351_v14 = vsub.f32 %v321_v12, %v579_v57 }
 0x278   : > { %588 = vlog2.f32 %v354_v13  ;;  %v353_v16 = vadd.f32 %v587_v15, %v351_v14 }
 0x27a   : > { %v355_v17 = vmax.f32 %v353_v16, 1.1754944e-38 }
 0x27c   : > { %590 = vlog2.f32 %v355_v17 }
 0x282   : > { %v589_v18 = vpop.eup %588 }
 0x283   : > { %v357_v19 = vmul.f32 0.6931472, %v589_v18 }
 0x285   : > { %v360_v20 = vsub.f32 %v342_v61, %v357_v19 }
 0x286   : > { %v591_v21 = vpop.eup %590 }
 0x287   : > { %362 = vst [vmem:[%s176_s17] sm:$0xff] %v360_v20  ;;  %v359_v22 = vmul.f32 0.6931472, %v591_v21 }
 0x289   : > { %v361_v23 = vsub.f32 %v343_v0, %v359_v22 }
 0x28b   : > { %363 = vst [vmem:[%s176_s17 + $0x8] sm:$0xff] %v361_v23 }
 0x28c   : > { %663 = shalt.err (!%p660_p7)
}
 0x28d   : > { %s664_s18 = scalar_lea.hbm %s907_s28, 256  ;;  %s668_s20 = scalar_lea.hbm %s955_s2, 512 }
 0x28e   : > { %p665_p9 = scmp.ne.s32.totalorder %s907_s28, %s664_s18  ;;  %p669_p5 = scmp.lt.u32.totalorder %s907_s28, %s955_s2 }
 0x28f   : > { %p670_p11 = scmp.lt.u32.totalorder %s668_s20, %s664_s18  ;;  %p672_p4 = scmp.lt.u32.totalorder %s664_s18, %s907_s28 }
 0x290   : > { %p666_p2 = pnand %p665_p9, %p839_p12 }
 0x291   : > { %p671_p1 = por %p670_p11, %p669_p5 }
 0x292   : > { %p667_p0 = pneg %p666_p2 }
 0x293   : > { %p673_p6 = por %p672_p4, %p671_p1 }
 0x295   : > { %p674_p8 = pnand %p673_p6, %p667_p0 }
 0x297   : > { %677 = shalt.err (!%p674_p8)
}
 0x298   : > { %s731_s30 = smov 128   ;;  %s732_s3 = smov 8  }
 0x299   : > { %507 = dma.vmem_to_hbm [thread:$0]  (%p839_p12), %s909_s27, 256, %s907_s28, %s365_s4, %s731_s30, %s731_s30, %s732_s3  }
 0x29a PF: > { %s393_s15 = sand.u32 1, %s708_s9   ;;  %p970_p10 = scmp.ne.s32.totalorder %s960_s16, 0 }
 0x29b   : > { %p971_p13 = scmp.ge.s32.totalorder %s720_s12, 2  ;;  %s394_s17 = scalar_lea.sflag [#allocation6], %s393_s15 }
 0x29d   : > { %p518_p3 = pnand %p971_p13, %p970_p10 }
 0x29f   : > { %703 = dma.done.wait (!%p518_p3), %s394_s17, 256  }
 0x2a0   : > { %705 = vsyncadd (!%p518_p3), %s394_s17, 4294967040  ;;  %p16_p7 = scmp.ge.s32.totalorder %s804_s21, 4   ;;  %s972_s9 = smov %s712_s10 }
 0x2a1   : > { %s973_s10 = smov %s716_s11  ;;  %s974_s11 = smov %s835_s8 }
 0x2a2   : > { %s975_s12 = smov %s804_s21  ;;  %18 = sbr.rel (!%p16_p7) target bundleno = 6 (0x6), region = 77 }
 0x2a9   :  { %399 = vsyncpa [#allocation5], 1 }
 0x2aa   :  { %401 = vsyncpa [#allocation5 + $0x1], 1 }
 0x2ab   :  { %402 = vsyncpa [#allocation8], 1 }
 0x2ac   :  { %403 = vsyncpa [#allocation6], 1 }
 0x2ad   :  { %405 = vsyncpa [#allocation6 + $0x1], 1 }

</bundles_post_ra>
